<compile_context>
chip_gen: v7x
topology: tpu7x:2x2x1
jax: 0.10.0
libtpu: 0.0.40
codegen_flags: <defaults>
</compile_context>

<pallas_src>
import functools

import jax
import jax.numpy as jnp
from jax.experimental import pallas as pl
from jax.experimental.pallas import tpu as pltpu

LANE = 128
ACC_ROWS = 32                 # fixed accumulator height: 4 sublane-groups so
                              # the min/max fold chain pipelines on the VALU
_PALLAS_MIN_ELEMS = 1 << 14   # below this a plain XLA reduce wins


def _round_up(x, m):
    return ((x + m - 1) // m) * m


@functools.lru_cache(maxsize=None)
def _num_tensorcores() -> int:
    """TensorCores per chip (2 on v7x, 1 on v5e/v6e). Never raises."""
    try:
        info = pltpu.get_tpu_info()
        for attr in ("num_tensorcores", "tensorcore_count", "num_cores",
                     "core_count", "cores_per_chip"):
            n = getattr(info, attr, None)
            if isinstance(n, int) and 1 <= n <= 8:
                return n
    except Exception:
        pass
    try:
        kind = jax.devices()[0].device_kind.lower()
        if "v7" in kind:          # v7x: 2 TensorCores per chip
            return 2
    except Exception:
        pass
    return 1


# ----------------------------------------------------------------------------
# Pallas kernel: global min / max reduction
# ----------------------------------------------------------------------------
def _minmax_kernel(x_ref, out_ref, min_sc, max_sc, *, nrows, bpc):
    """grid = (ncores, blocks_per_core); x_ref block is (tm, 128)."""
    c = pl.program_id(0)
    i = pl.program_id(1)
    last = pl.num_programs(1) - 1
    tm = x_ref.shape[0]
    groups = tm // ACC_ROWS              # tm is a multiple of ACC_ROWS

    @pl.when(i == 0)
    def _():
        min_sc[...] = jnp.full_like(min_sc, jnp.inf)
        max_sc[...] = jnp.full_like(max_sc, -jnp.inf)

    row0 = (c * bpc + i) * tm            # first global row of this block

    # Hot path: block fully in bounds.  Fold the (tm,128) tile into the fixed
    # (32,128) accumulators with a leading-axis tree reduce: pure VPU work
    # (no XLU), ~1 vld per input vreg and no per-vreg accumulator writeback,
    # so the vst slot no longer binds on v6e/v7x.
    @pl.when(row0 + tm <= nrows)
    def _():
        blk = x_ref[...].reshape(groups, ACC_ROWS, LANE)
        min_sc[...] = jnp.minimum(min_sc[...], blk.min(axis=0))
        max_sc[...] = jnp.maximum(max_sc[...], blk.max(axis=0))

    # Tail path (at most once per core): partial (or clamped, fully
    # out-of-range) block -> mask rows past the valid extent with the min/max
    # identities.  Done in f32 regardless of streamed dtype (runs once; keeps
    # the masked-select lowering trivial on all chip generations).
    @pl.when(row0 + tm > nrows)
    def _():
        blk = x_ref[...].astype(jnp.float32)
        rows = row0 + jax.lax.broadcasted_iota(jnp.int32, blk.shape, 0)
        valid = rows < nrows
        bmin = jnp.where(valid, blk, jnp.inf).reshape(groups, ACC_ROWS, LANE)
        bmax = jnp.where(valid, blk, -jnp.inf).reshape(groups, ACC_ROWS, LANE)
        min_sc[...] = jnp.minimum(min_sc[...],
                                  bmin.min(axis=0).astype(min_sc.dtype))
        max_sc[...] = jnp.maximum(max_sc[...],
                                  bmax.max(axis=0).astype(max_sc.dtype))

    # Epilogue (once per core): single cross-sublane reduce and ONE fused
    # lane-dense (2,128) store.
    @pl.when(i == last)
    def _():
        mn = jnp.min(min_sc[...].astype(jnp.float32), axis=0, keepdims=True)
        mx = jnp.max(max_sc[...].astype(jnp.float32), axis=0, keepdims=True)
        out_ref[0, :, :] = jnp.concatenate([mn, mx], axis=0)


@functools.partial(jax.jit, static_argnames=("tm", "ncores"))
def _pallas_global_minmax_2d(x2d, *, tm, ncores):
    """x2d: (M, 128) f32 or bf16, tm a multiple of ACC_ROWS and <= M.
    Returns (min, max) scalar f32."""
    M, D = x2d.shape
    nblk = pl.cdiv(M, tm)
    bpc = pl.cdiv(nblk, ncores)          # blocks per core (inner grid extent)

    kernel = functools.partial(_minmax_kernel, nrows=M, bpc=bpc)

    out = pl.pallas_call(
        kernel,
        out_shape=jax.ShapeDtypeStruct((ncores, 2, LANE), jnp.float32),
        grid_spec=pltpu.PrefetchScalarGridSpec(
            num_scalar_prefetch=0,
            grid=(ncores, bpc),
            in_specs=[
                pl.BlockSpec(
                    (tm, D),
                    # Clamp so over-provisioned blocks (when nblk % ncores != 0)
                    # never DMA past the array; their rows are masked in-kernel.
                    lambda c, i: (jnp.minimum(c * bpc + i, nblk - 1), 0),
                    # TODO(synk): sweep pipeline_mode=pl.Buffered(3) for deeper
                    # prefetch once a trace shows exposed DMA.
                )
            ],
            out_specs=pl.BlockSpec((1, 2, LANE), lambda c, i: (c, 0, 0)),
            scratch_shapes=[
                pltpu.VMEM((ACC_ROWS, LANE), x2d.dtype),   # running min (fixed)
                pltpu.VMEM((ACC_ROWS, LANE), x2d.dtype),   # running max (fixed)
            ],
        ),
        compiler_params=pltpu.CompilerParams(
            # TODO(synk): verify in a trace that the leading "parallel" axis
            # actually shards across the two v7x TensorCores; if not, switch
            # to pltpu.CORE_PARALLEL / pl.core_map.
            dimension_semantics=("parallel", "arbitrary"),
        ),
        cost_estimate=pl.CostEstimate(
            flops=2 * M * D,
            transcendentals=0,
            bytes_accessed=M * D * x2d.dtype.itemsize,
        ),
    )(x2d)

    min_val = jnp.min(out[:, 0, :])
    max_val = jnp.max(out[:, 1, :])
    return min_val, max_val


def pallas_global_minmax(x, *, tm=2048, force_kernel=False):
    """Global (min, max) of an arbitrary-shaped array, returned as f32 scalars.

    `tm` is the block height in 128-lane rows: 2048 rows -> 1 MiB f32 tiles
    (2 MiB double-buffered), well inside default scoped VMEM on v5e/v6e/v7x
    while amortizing the ~0.35 us per-grid-step overhead.  The accumulators
    are a fixed (32,128) pair, so VMEM usage no longer scales with tm.
    """
    xf = jnp.ravel(x)
    # f32/bf16 stream natively (bf16 -> f32 widening of min/max is exact, so
    # skipping the materialized cast halves HBM traffic).  Other dtypes follow
    # the module spec and are cast to f32.
    if xf.dtype not in (jnp.dtype(jnp.float32), jnp.dtype(jnp.bfloat16)):
        xf = xf.astype(jnp.float32)
    n = xf.shape[0]

    r = n % LANE
    body = n - r
    # Tiny inputs (or a body too small to tile): fixed pallas_call + per-step
    # overhead dominates; a plain XLA reduce is faster and avoids compiling a
    # kernel per tiny shape.
    if (not force_kernel and n < _PALLAS_MIN_ELEMS) or body < ACC_ROWS * LANE:
        return (jnp.min(xf).astype(jnp.float32),
                jnp.max(xf).astype(jnp.float32))

    # Sub-128-element tail: reduce it with plain jnp (reads < 512 B) and merge
    # with the kernel result -- no jnp.pad full-array read+write copy.
    tail_min = tail_max = None
    if r != 0:
        tail = xf[body:]
        tail_min = jnp.min(tail).astype(jnp.float32)
        tail_max = jnp.max(tail).astype(jnp.float32)
        xf = xf[:body]
        # TODO(synk): a manual-DMA (memory_space=pl.ANY) body path would make
        # this prefix view copy-free too; the common r == 0 case already is.

    x2d = xf.reshape(-1, LANE)           # lane-dense view (zero-copy when r==0)
    M = x2d.shape[0]                     # >= ACC_ROWS by the guard above

    # Block height: multiple of ACC_ROWS, never larger than the array.
    tm_eff = min((max(tm, ACC_ROWS) // ACC_ROWS) * ACC_ROWS,
                 (M // ACC_ROWS) * ACC_ROWS)
    nblk = pl.cdiv(M, tm_eff)
    hw = _num_tensorcores()
    ncores = hw if nblk >= hw else 1     # split the reduction across TCs (v7x)

    mn, mx = _pallas_global_minmax_2d(x2d, tm=tm_eff, ncores=ncores)
    if tail_min is not None:
        mn = jnp.minimum(mn, tail_min)
        mx = jnp.maximum(mx, tail_max)
    return mn, mx


# ----------------------------------------------------------------------------
# BaseObserver: running range + qparam computation (glue in plain JAX)
# ----------------------------------------------------------------------------
class BaseObserver:
    # NOTE: keeps Python-side mutable state (initialize / lb / ub) like the
    # PyTorch module; correct eagerly, do not wrap __call__ in jit/scan.
    def __init__(self, nbit: int, unsigned: bool = True):
        self.nbit = nbit
        self.unsigned = unsigned
        self.initialize = True
        if self.unsigned:
            self.qlb = 0
            self.qub = 2 ** self.nbit - 1
        else:
            self.qlb = -(2 ** (self.nbit - 1))
            self.qub = 2 ** (self.nbit - 1) - 1
        # registered range buffers
        self.lb = jnp.asarray(-jnp.inf, dtype=jnp.float32)
        self.ub = jnp.asarray(jnp.inf, dtype=jnp.float32)

    def get_bound(self, x):
        min_val, max_val = pallas_global_minmax(x)  # Pallas reduction hot path
        if self.initialize:
            self.lb = min_val
            self.ub = max_val
            self.initialize = False
        else:
            self.lb = jnp.minimum(self.lb, min_val)
            self.ub = jnp.maximum(self.ub, max_val)

    def calculate_qparam(self, x=None):
        # NOTE: semantics intentionally match the PyTorch reference (no eps
        # clamp; a constant tensor yields scale == 0 / NaN zero_point there too).
        if self.unsigned:
            scale = (self.ub - self.lb) / float(self.qub - self.qlb)
            zero_point = self.qlb - jnp.round(self.lb / scale)
        else:
            max_val_pos = jnp.maximum(-self.lb, self.ub)
            scale = max_val_pos / (float(self.qub - self.qlb) / 2.0)
            # The reference casts x to f32 before this point, so the signed
            # zero_point dtype is always float32.
            zero_point = jnp.zeros_like(max_val_pos)
        return scale, zero_point

    def __call__(self, x):
        # The reference casts non-f32 inputs to f32 before min/max; for bf16
        # the widening is exact, so pallas_global_minmax streams the native
        # dtype (halving HBM traffic) and casts other dtypes internally --
        # results are identical to cast-then-reduce.
        self.get_bound(x)
        scale, zero_point = self.calculate_qparam(x)
        return scale, zero_point


# ----------------------------------------------------------------------------
# Main
# ----------------------------------------------------------------------------
if __name__ == "__main__":
    key = jax.random.PRNGKey(0)
    k0, k1, k2, k3, k4 = jax.random.split(key, 5)

    # --- BaseObserver on a small NCHW activation (module-consistent shape) ---
    x = jax.random.normal(k0, (2, 4, 16, 16), dtype=jnp.float32)
    obs = BaseObserver(nbit=8, unsigned=True)
    scale, zero_point = obs(x)
    jax.block_until_ready((scale, zero_point))

    ref_min, ref_max = jnp.min(x), jnp.max(x)
    ref_scale = (ref_max - ref_min) / float(obs.qub - obs.qlb)
    ref_zp = obs.qlb - jnp.round(ref_min / ref_scale)
    assert jnp.allclose(scale, ref_scale, rtol=1e-6, atol=1e-6)
    assert jnp.allclose(zero_point, ref_zp, rtol=1e-6, atol=1e-6)

    # second call exercises the running-range (non-initialize) path
    x2 = jax.random.normal(k1, (2, 4, 16, 16), dtype=jnp.float32) * 2.0
    scale2, zp2 = obs(x2)
    jax.block_until_ready((scale2, zp2))

    # --- Pallas kernel: multi-block f32 path ---
    xa = jax.random.normal(k2, (8, 4, 32, 32), dtype=jnp.float32)   # 32768 elems
    mn, mx = pallas_global_minmax(xa, tm=64)
    jax.block_until_ready((mn, mx))
    assert jnp.allclose(mn, jnp.min(xa)) and jnp.allclose(mx, jnp.max(xa))

    # --- multi-block + partial last tile (+ clamped block on 2-TC chips) ---
    xb = jax.random.normal(k3, (4, 8, 32, 33), dtype=jnp.float32)   # 264 rows
    mn, mx = pallas_global_minmax(xb, tm=64)
    jax.block_until_ready((mn, mx))
    assert jnp.allclose(mn, jnp.min(xb)) and jnp.allclose(mx, jnp.max(xb))

    # --- misaligned size (n % 128 != 0): wrapper tail-merge path ---
    xc = jax.random.normal(k4, (2, 3, 37, 53), dtype=jnp.float32)   # 11766 elems
    mn, mx = pallas_global_minmax(xc, tm=32, force_kernel=True)
    jax.block_until_ready((mn, mx))
    assert jnp.allclose(mn, jnp.min(xc)) and jnp.allclose(mx, jnp.max(xc))

    # --- bf16 fast path (streams bf16 natively, partial last tile) ---
    xd = jax.random.normal(k2, (8, 4, 32, 32), dtype=jnp.float32).astype(jnp.bfloat16)
    mn, mx = pallas_global_minmax(xd, tm=96)
    jax.block_until_ready((mn, mx))
    assert jnp.allclose(mn, jnp.min(xd).astype(jnp.float32))
    assert jnp.allclose(mx, jnp.max(xd).astype(jnp.float32))

    print("KERNEL_OK")
</pallas_src>

<mosaic_0001>
module attributes {stable_mosaic.version = 11 : i64} {
  func.func @_minmax_kernel(%arg0: i32, %arg1: i32, %arg2: memref<64x128xf32, #tpu.memory_space<vmem>>, %arg3: memref<1x2x128xf32, #tpu.memory_space<vmem>>, %arg4: memref<32x128xf32, #tpu.memory_space<vmem>>, %arg5: memref<32x128xf32, #tpu.memory_space<vmem>>) attributes {dimension_semantics = [#tpu.dimension_semantics<parallel>, #tpu.dimension_semantics<arbitrary>], iteration_bounds = array<i64: 1, 4>, scalar_prefetch = 0 : i64, scratch_operands = 2 : i64, tpu.core_type = #tpu.core_type<tc>, window_params = [{transform_indices = @transform_0, window_bounds = array<i64: 64, 128>}, {transform_indices = @transform_1, window_bounds = array<i64: 1, 2, 128>}]} {
    %c0_i32 = arith.constant 0 : i32
    %0 = arith.cmpi eq, %arg1, %c0_i32 : i32
    %1 = arith.extui %0 : i1 to i32
    %c0_i32_0 = arith.constant 0 : i32
    %2 = arith.cmpi ne, %1, %c0_i32_0 : i32
    scf.if %2 {
      %cst = arith.constant 0x7F800000 : f32
      %17 = vector.broadcast %cst : f32 to vector<32x128xf32>
      %c0 = arith.constant 0 : index
      %c0_7 = arith.constant 0 : index
      %18 = vector.load %arg4[%c0, %c0_7] : memref<32x128xf32, #tpu.memory_space<vmem>>, vector<32x128xf32>
      tpu.vector_store %arg4[%c0, %c0_7], %17 {strides = array<i32>} : memref<32x128xf32, #tpu.memory_space<vmem>>, vector<32x128xf32>,
      %cst_8 = arith.constant 0xFF800000 : f32
      %19 = vector.broadcast %cst_8 : f32 to vector<32x128xf32>
      %c0_9 = arith.constant 0 : index
      %c0_10 = arith.constant 0 : index
      %20 = vector.load %arg5[%c0_9, %c0_10] : memref<32x128xf32, #tpu.memory_space<vmem>>, vector<32x128xf32>
      tpu.vector_store %arg5[%c0_9, %c0_10], %19 {strides = array<i32>} : memref<32x128xf32, #tpu.memory_space<vmem>>, vector<32x128xf32>,
    } else {
    }
    %c4_i32 = arith.constant 4 : i32
    %3 = arith.muli %arg0, %c4_i32 : i32
    %4 = arith.addi %3, %arg1 : i32
    %c64_i32 = arith.constant 64 : i32
    %5 = arith.muli %4, %c64_i32 : i32
    %c64_i32_1 = arith.constant 64 : i32
    %6 = arith.addi %5, %c64_i32_1 : i32
    %c256_i32 = arith.constant 256 : i32
    %7 = arith.cmpi sle, %6, %c256_i32 : i32
    %8 = arith.extui %7 : i1 to i32
    %c0_i32_2 = arith.constant 0 : i32
    %9 = arith.cmpi ne, %8, %c0_i32_2 : i32
    scf.if %9 {
      %c0 = arith.constant 0 : index
      %c0_7 = arith.constant 0 : index
      %17 = vector.load %arg2[%c0, %c0_7] : memref<64x128xf32, #tpu.memory_space<vmem>>, vector<64x128xf32>
      %18 = vector.shape_cast %17 : vector<64x128xf32> to vector<2x32x128xf32>
      %c0_8 = arith.constant 0 : index
      %c0_9 = arith.constant 0 : index
      %19 = vector.load %arg4[%c0_8, %c0_9] : memref<32x128xf32, #tpu.memory_space<vmem>>, vector<32x128xf32>
      %cst = arith.constant dense<0x7F800000> : vector<32x128xf32>
      %20 = vector.multi_reduction <minimumf>, %18, %cst [0] : vector<2x32x128xf32> to vector<32x128xf32>
      %21 = arith.minimumf %19, %20 : vector<32x128xf32>
      %c0_10 = arith.constant 0 : index
      %c0_11 = arith.constant 0 : index
      %22 = vector.load %arg4[%c0_10, %c0_11] : memref<32x128xf32, #tpu.memory_space<vmem>>, vector<32x128xf32>
      tpu.vector_store %arg4[%c0_10, %c0_11], %21 {strides = array<i32>} : memref<32x128xf32, #tpu.memory_space<vmem>>, vector<32x128xf32>,
      %c0_12 = arith.constant 0 : index
      %c0_13 = arith.constant 0 : index
      %23 = vector.load %arg5[%c0_12, %c0_13] : memref<32x128xf32, #tpu.memory_space<vmem>>, vector<32x128xf32>
      %cst_14 = arith.constant dense<0xFF800000> : vector<32x128xf32>
      %24 = vector.multi_reduction <maximumf>, %18, %cst_14 [0] : vector<2x32x128xf32> to vector<32x128xf32>
      %25 = arith.maximumf %23, %24 : vector<32x128xf32>
      %c0_15 = arith.constant 0 : index
      %c0_16 = arith.constant 0 : index
      %26 = vector.load %arg5[%c0_15, %c0_16] : memref<32x128xf32, #tpu.memory_space<vmem>>, vector<32x128xf32>
      tpu.vector_store %arg5[%c0_15, %c0_16], %25 {strides = array<i32>} : memref<32x128xf32, #tpu.memory_space<vmem>>, vector<32x128xf32>,
    } else {
    }
    %c64_i32_3 = arith.constant 64 : i32
    %10 = arith.addi %5, %c64_i32_3 : i32
    %c256_i32_4 = arith.constant 256 : i32
    %11 = arith.cmpi sgt, %10, %c256_i32_4 : i32
    %12 = arith.extui %11 : i1 to i32
    %c0_i32_5 = arith.constant 0 : i32
    %13 = arith.cmpi ne, %12, %c0_i32_5 : i32
    scf.if %13 {
      %c0 = arith.constant 0 : index
      %c0_7 = arith.constant 0 : index
      %17 = vector.load %arg2[%c0, %c0_7] : memref<64x128xf32, #tpu.memory_space<vmem>>, vector<64x128xf32>
      %18 = tpu.iota {dimensions = array<i32: 0>} : vector<64x128xi32>
      %19 = vector.broadcast %5 : i32 to vector<64x128xi32>
      %20 = arith.addi %19, %18 : vector<64x128xi32>
      %c256_i32_8 = arith.constant 256 : i32
      %21 = vector.broadcast %c256_i32_8 : i32 to vector<64x128xi32>
      %22 = arith.cmpi slt, %20, %21 : vector<64x128xi32>
      %cst = arith.constant 0x7F800000 : f32
      %23 = vector.broadcast %cst : f32 to vector<64x128xf32>
      %24 = arith.select %22, %17, %23 : vector<64x128xi1>, vector<64x128xf32>
      %25 = vector.shape_cast %24 : vector<64x128xf32> to vector<2x32x128xf32>
      %cst_9 = arith.constant 0xFF800000 : f32
      %26 = vector.broadcast %cst_9 : f32 to vector<64x128xf32>
      %27 = arith.select %22, %17, %26 : vector<64x128xi1>, vector<64x128xf32>
      %28 = vector.shape_cast %27 : vector<64x128xf32> to vector<2x32x128xf32>
      %c0_10 = arith.constant 0 : index
      %c0_11 = arith.constant 0 : index
      %29 = vector.load %arg4[%c0_10, %c0_11] : memref<32x128xf32, #tpu.memory_space<vmem>>, vector<32x128xf32>
      %cst_12 = arith.constant dense<0x7F800000> : vector<32x128xf32>
      %30 = vector.multi_reduction <minimumf>, %25, %cst_12 [0] : vector<2x32x128xf32> to vector<32x128xf32>
      %31 = arith.minimumf %29, %30 : vector<32x128xf32>
      %c0_13 = arith.constant 0 : index
      %c0_14 = arith.constant 0 : index
      %32 = vector.load %arg4[%c0_13, %c0_14] : memref<32x128xf32, #tpu.memory_space<vmem>>, vector<32x128xf32>
      tpu.vector_store %arg4[%c0_13, %c0_14], %31 {strides = array<i32>} : memref<32x128xf32, #tpu.memory_space<vmem>>, vector<32x128xf32>,
      %c0_15 = arith.constant 0 : index
      %c0_16 = arith.constant 0 : index
      %33 = vector.load %arg5[%c0_15, %c0_16] : memref<32x128xf32, #tpu.memory_space<vmem>>, vector<32x128xf32>
      %cst_17 = arith.constant dense<0xFF800000> : vector<32x128xf32>
      %34 = vector.multi_reduction <maximumf>, %28, %cst_17 [0] : vector<2x32x128xf32> to vector<32x128xf32>
      %35 = arith.maximumf %33, %34 : vector<32x128xf32>
      %c0_18 = arith.constant 0 : index
      %c0_19 = arith.constant 0 : index
      %36 = vector.load %arg5[%c0_18, %c0_19] : memref<32x128xf32, #tpu.memory_space<vmem>>, vector<32x128xf32>
      tpu.vector_store %arg5[%c0_18, %c0_19], %35 {strides = array<i32>} : memref<32x128xf32, #tpu.memory_space<vmem>>, vector<32x128xf32>,
    } else {
    }
    %c3_i32 = arith.constant 3 : i32
    %14 = arith.cmpi eq, %arg1, %c3_i32 : i32
    %15 = arith.extui %14 : i1 to i32
    %c0_i32_6 = arith.constant 0 : i32
    %16 = arith.cmpi ne, %15, %c0_i32_6 : i32
    scf.if %16 {
      %c0 = arith.constant 0 : index
      %c0_7 = arith.constant 0 : index
      %17 = vector.load %arg4[%c0, %c0_7] : memref<32x128xf32, #tpu.memory_space<vmem>>, vector<32x128xf32>
      %cst = arith.constant dense<0x7F800000> : vector<128xf32>
      %18 = vector.multi_reduction <minimumf>, %17, %cst [0] : vector<32x128xf32> to vector<128xf32>
      %19 = vector.shape_cast %18 : vector<128xf32> to vector<1x128xf32>
      %c0_8 = arith.constant 0 : index
      %c0_9 = arith.constant 0 : index
      %20 = vector.load %arg5[%c0_8, %c0_9] : memref<32x128xf32, #tpu.memory_space<vmem>>, vector<32x128xf32>
      %cst_10 = arith.constant dense<0xFF800000> : vector<128xf32>
      %21 = vector.multi_reduction <maximumf>, %20, %cst_10 [0] : vector<32x128xf32> to vector<128xf32>
      %22 = vector.shape_cast %21 : vector<128xf32> to vector<1x128xf32>
      %23 = tpu.concatenate %19, %22 in 0 : vector<1x128xf32>, vector<1x128xf32> -> vector<2x128xf32>
      %c0_11 = arith.constant 0 : index
      %c0_12 = arith.constant 0 : index
      %c0_13 = arith.constant 0 : index
      %24 = vector.load %arg3[%c0_11, %c0_12, %c0_13] : memref<1x2x128xf32, #tpu.memory_space<vmem>>, vector<1x2x128xf32>
      %25 = vector.shape_cast %24 : vector<1x2x128xf32> to vector<2x128xf32>
      %26 = vector.shape_cast %23 : vector<2x128xf32> to vector<1x2x128xf32>
      tpu.vector_store %arg3[%c0_11, %c0_12, %c0_13], %26 {strides = array<i32>} : memref<1x2x128xf32, #tpu.memory_space<vmem>>, vector<1x2x128xf32>,
    } else {
    }
    return
  }
  func.func @transform_0(%arg0: i32, %arg1: i32) -> (i32, i32) {
    %c4_i32 = arith.constant 4 : i32
    %0 = arith.muli %arg0, %c4_i32 : i32
    %1 = arith.addi %0, %arg1 : i32
    %c3_i32 = arith.constant 3 : i32
    %2 = arith.minsi %1, %c3_i32 : i32
    %c0_i32 = arith.constant 0 : i32
    %c0_i32_0 = arith.constant 0 : i32
    return %2, %c0_i32 : i32, i32
  }
  func.func @transform_1(%arg0: i32, %arg1: i32) -> (i32, i32, i32) {
    %c0_i32 = arith.constant 0 : i32
    %c0_i32_0 = arith.constant 0 : i32
    %c0_i32_1 = arith.constant 0 : i32
    return %arg0, %c0_i32, %c0_i32_0 : i32, i32, i32
  }
}

</mosaic_0001>

<bundles_post_ra>
// kernel: _pallas_global_minmax_2d.1
= control target key start
LH: loop header
LB: loop body
LE: loop exit
PB: predicated region body
PF: predicated region fallthrough
CT: control target
= control target key end

     0   :  { %6 = vsyncpa [#allocation5], 0  ;;  %s748_s0 = inlined_call_operand.hbm [shape: f32[256,128], index: 0, kind: input, shape index: {}]   ;;  %s749_s1 = inlined_call_operand.vmem [shape: f32[1,2,128], index: 1, kind: output, shape index: {}]  }
   0x1   :  { %8 = vsyncpa [#allocation5 + $0x1], 0  ;;  %s586_s6 = smov 0   ;;  %s588_s7 = smov 0  }
   0x2   :  { %s590_s8 = smov 0   ;;  %s592_s9 = smov 0  }
   0x3   :  { %s594_s10 = smov 0   ;;  %s596_s11 = smov 0  }
   0x4 LB: > { %s413_s12 = sadd.s32 4294967295, %s569_s11   ;;  %s23_s13 = sadd.s32 1, %s565_s10  ;;  %s569_s11 = sphi %s596_s11, %s14_s11   ;;  %s565_s10 = sphi %s594_s10, %s756_s10   ;;  %s561_s9 = sphi %s592_s9, %s755_s9   ;;  %s557_s8 = sphi %s590_s8, %s754_s8   ;;  %s553_s7 = sphi %s588_s7, %s753_s7   ;;  %s549_s6 = sphi %s586_s6, %s752_s6  }
   0x5   : > { %p24_p0 = scmp.ge.s32.totalorder %s23_s13, 4  ;;  %p32_p1 = scmp.lt.s32.totalorder %s565_s10, 3 }
   0x6   : > { %s41_s14 = sadd.s32 1, %s557_s8  ;;  %p48_p2 = scmp.ne.s32.totalorder %s557_s8, %s553_s7 }
   0x7   : > { %s758_s13 = smov (%p24_p0, %s23_s13), 0  ;;  %p49_p4 = scmp.eq.s32.totalorder %s569_s11, 0 }
   0x8   : > { %s33_s15 = scalar_select %p32_p1, %s565_s10, 3 }
   0x9   : > { %p36_p3 = scmp.lt.s32.totalorder %s758_s13, 3  ;;  %p54_p5 = scmp.ne.s32.totalorder %s553_s7, %s549_s6 }
   0xa   : > { %p55_p6 = scmp.eq.s32.totalorder %s413_s12, 0  ;;  %p50_p7 = por %p49_p4, %p48_p2 }
   0xb   : > { %s37_s16 = scalar_select %p36_p3, %s758_s13, 3 }
   0xc   : > { %p627_p8 = por %p55_p6, %p54_p5  ;;  %p436_p10 = scmp.lt.s32.totalorder %s569_s11, 4 }
   0xd   : > { %s38_s18 = ssub.s32 %s33_s15, %s37_s16  ;;  %s104_s19 = sand.u32 1, %s557_s8  }
   0xe   : > { %p39_p9 = scmp.eq.s32.totalorder %s38_s18, 0  ;;  %s429_s20 = sshll.u32 %s33_s15, 10 }
   0xf   : > { %s416_s22 = sshll.u32 %s104_s19, 6  ;;  %s639_s25 = scalar_lea.hbm %s748_s0, %s429_s20 }
  0x10   : > { %s634_s21 = scalar_select %p39_p9, %s557_s8, %s41_s14  }
  0x11   : > { %s108_s26 = scalar_lea.vmem [#allocation4], %s416_s22  ;;  %p641_p11 = pnand %p436_p10, %p50_p7 }
  0x12   : > { %s119_s27 = sshll.u32 %s108_s26, 4  ;;  %s647_s29 = scalar_lea.sflag [#allocation5], %s104_s19  ;;  %s645_s27 = int_to_ptr.vmem [resolvable:$true] %s119_s27 }
  0x13   : > { %s489_s30 = scalar_lea.hbm %s639_s25, 1024  ;;  %p491_p13 = pneg %p641_p11 }
  0x14   : > { %p490_p12 = scmp.ne.s32.totalorder %s639_s25, %s489_s30  ;;  %s494_s4 = scalar_lea.hbm %s748_s0, 4096 }
  0x15   : > { %p495_p2 = scmp.lt.u32.totalorder %s639_s25, %s748_s0  ;;  %p496_p3 = scmp.lt.u32.totalorder %s494_s4, %s489_s30 }
  0x16   : > { %p492_p0 = pnand %p491_p13, %p490_p12  ;;  %p498_p5 = scmp.lt.u32.totalorder %s489_s30, %s639_s25 }
  0x17   : > { %p497_p4 = por %p496_p3, %p495_p2 }
  0x18   : > { %p493_p1 = pneg %p492_p0 }
  0x19   : > { %p499_p6 = por %p498_p5, %p497_p4 }
  0x1b   : > { %p500_p7 = pnand %p499_p6, %p493_p1 }
  0x1d   : > { %503 = shalt.err (!%p500_p7)
}
  0x1e   : > { %s504_s12 = scalar_lea.vmem %s645_s27, 1024  ;;  %s571_s14 = smov [#allocation4]  }
  0x1f   : > { %p505_p9 = scmp.ne.s32.totalorder %s645_s27, %s504_s12  ;;  %s509_s15 = sshll.u32 %s571_s14, 4  ;;  %s510_s15 = int_to_ptr.vmem [resolvable:$false] %s509_s15 }
  0x20   : > { %s511_s16 = scalar_lea.vmem %s510_s15, 2048  ;;  %p512_p0 = scmp.lt.s32.totalorder %s645_s27, %s510_s15 }
  0x21   : > { %p507_p10 = pnand %p505_p9, %p491_p13  ;;  %p513_p2 = scmp.lt.s32.totalorder %s511_s16, %s504_s12 }
  0x23   : > { %p508_p12 = pneg %p507_p10  ;;  %p514_p3 = por %p513_p2, %p512_p0 }
  0x25   : > { %p515_p4 = pnand %p514_p3, %p508_p12 }
  0x27   : > { %518 = shalt.err (!%p515_p4)
}
  0x28   : > { %s572_s18 = smov 128   ;;  %s573_s19 = smov 8  }
  0x29   : > { %435 = dma.hbm_to_vmem [thread:$0]  (!%p641_p11), %s639_s25, 1024, %s645_s27, %s647_s29, %s572_s18, %s572_s18, %s573_s19  }
  0x2a   : > { %p419_p13 = scmp.ge.s32.totalorder %s569_s11, 1  ;;  %p127_p1 = scmp.lt.s32.totalorder %s569_s11, 5 }
  0x2c   : > { %p128_p5 = pnand %p419_p13, %p127_p1 }
  0x2d   : > { %s133_s20 = sand.u32 (!%p128_p5), 1, %s553_s7  }
  0x2e   : > { %131 = sbr.rel (%p128_p5) target bundleno = 123 (0x7b), region = 24  ;;  %s420_s22 = sshll.u32 (!%p128_p5), %s133_s20, 6 }
  0x2f   : > { %s134_s23 = scalar_lea.sflag (!%p128_p5), [#allocation5], %s133_s20  ;;  %s678_s24 = scalar_lea.vmem (!%p128_p5), [#allocation4], %s420_s22 }
  0x35   : > { %544 = dma.done.wait (%p627_p8), %s134_s23, 1024  }
  0x36   : > { %546 = vsyncadd (%p627_p8), %s134_s23, 4294966272  ;;  %p421_p6 = scmp.ne.s32.totalorder %s561_s9, 0 }
  0x37   : > { %v574_v0 = vmov (!%p421_p6), inf   ;;  %v575_v1 = vmov (!%p421_p6), -inf  }
  0x38   : > { %167 = sbr.rel (%p421_p6) target bundleno = 63 (0x3f), region = 32  ;;  %168 = vst [vmem:[#allocation2] sm:$0xff] (!%p421_p6), %v574_v0  ;;  %169 = vst [vmem:[#allocation2 + $0x8] sm:$0xff] (!%p421_p6), %v574_v0 }
  0x39   : > { %170 = vst [vmem:[#allocation2 + $0x10] sm:$0xff] (!%p421_p6), %v574_v0  ;;  %171 = vst [vmem:[#allocation2 + $0x18] sm:$0xff] (!%p421_p6), %v574_v0 }
  0x3a   : > { %172 = vst [vmem:[#allocation3] sm:$0xff] (!%p421_p6), %v575_v1  ;;  %173 = vst [vmem:[#allocation3 + $0x8] sm:$0xff] (!%p421_p6), %v575_v1 }
  0x3b   : > { %174 = vst [vmem:[#allocation3 + $0x10] sm:$0xff] (!%p421_p6), %v575_v1  ;;  %175 = vst [vmem:[#allocation3 + $0x18] sm:$0xff] (!%p421_p6), %v575_v1 }
  0x3f PF: > { %s422_s25 = sshll.u32 %s561_s9, 6 }
  0x40   : > { %s688_s17 = sadd.s32 64, %s422_s25 }
  0x41   : > { %p423_p8 = scmp.gt.s32.totalorder %s688_s17, 256 }
  0x42   : > { %v184_v2 = vld [vmem:[%s678_s24] sm:$0xff] (!%p423_p8)  ;;  %v185_v6 = vld [vmem:[%s678_s24 + $0x8] sm:$0xff] (!%p423_p8)  ;;  %v186_v11 = vld [vmem:[%s678_s24 + $0x10] sm:$0xff] (!%p423_p8) }
  0x43   : > { %183 = sbr.rel (%p423_p8) target bundleno = 76 (0x4c), region = 36  ;;  %v188_v3 = vld [vmem:[%s678_s24 + $0x20] sm:$0xff] (!%p423_p8)  ;;  %v189_v7 = vld [vmem:[%s678_s24 + $0x28] sm:$0xff] (!%p423_p8)  ;;  %v190_v12 = vld [vmem:[%s678_s24 + $0x30] sm:$0xff] (!%p423_p8) }
  0x44   : > { %v192_v4 = vld [vmem:[#allocation2] sm:$0xff] (!%p423_p8)  ;;  %v196_v5 = vmin.f32 (!%p423_p8), %v184_v2, %v188_v3  ;;  %v193_v8 = vld [vmem:[#allocation2 + $0x8] sm:$0xff] (!%p423_p8)  ;;  %v212_v9 = vmax.f32 (!%p423_p8), %v184_v2, %v188_v3  ;;  %v197_v10 = vmin.f32 (!%p423_p8), %v185_v6, %v189_v7  ;;  %v194_v13 = vld [vmem:[#allocation2 + $0x10] sm:$0xff] (!%p423_p8)  ;;  %v213_v14 = vmax.f32 (!%p423_p8), %v185_v6, %v189_v7 }
  0x45   : > { %v198_v16 = vmin.f32 (!%p423_p8), %v186_v11, %v190_v12  ;;  %v187_v17 = vld [vmem:[%s678_s24 + $0x18] sm:$0xff] (!%p423_p8)  ;;  %v214_v20 = vmax.f32 (!%p423_p8), %v186_v11, %v190_v12  ;;  %v208_v23 = vld [vmem:[#allocation3] sm:$0xff] (!%p423_p8)  ;;  %v209_v24 = vld [vmem:[#allocation3 + $0x8] sm:$0xff] (!%p423_p8) }
  0x46   : > { %v200_v15 = vmin.f32 (!%p423_p8), %v192_v4, %v196_v5  ;;  %v191_v18 = vld [vmem:[%s678_s24 + $0x38] sm:$0xff] (!%p423_p8)  ;;  %v201_v21 = vmin.f32 (!%p423_p8), %v193_v8, %v197_v10  ;;  %v210_v25 = vld [vmem:[#allocation3 + $0x10] sm:$0xff] (!%p423_p8)  ;;  %v216_v28 = vmax.f32 (!%p423_p8), %v208_v23, %v212_v9  ;;  %v217_v29 = vmax.f32 (!%p423_p8), %v209_v24, %v213_v14 }
  0x47   : > { %v195_v19 = vld [vmem:[#allocation2 + $0x18] sm:$0xff] (!%p423_p8)  ;;  %v199_v22 = vmin.f32 (!%p423_p8), %v187_v17, %v191_v18  ;;  %v215_v26 = vmax.f32 (!%p423_p8), %v187_v17, %v191_v18  ;;  %v202_v27 = vmin.f32 (!%p423_p8), %v194_v13, %v198_v16  ;;  %v218_v30 = vmax.f32 (!%p423_p8), %v210_v25, %v214_v20 }
  0x48   : > { %204 = vst [vmem:[#allocation2] sm:$0xff] (!%p423_p8), %v200_v15  ;;  %v211_v31 = vld [vmem:[#allocation3 + $0x18] sm:$0xff] (!%p423_p8)  ;;  %205 = vst [vmem:[#allocation2 + $0x8] sm:$0xff] (!%p423_p8), %v201_v21 }
  0x49   : > { %v203_v32 = vmin.f32 (!%p423_p8), %v195_v19, %v199_v22  ;;  %v219_v33 = vmax.f32 (!%p423_p8), %v211_v31, %v215_v26  ;;  %206 = vst [vmem:[#allocation2 + $0x10] sm:$0xff] (!%p423_p8), %v202_v27  ;;  %220 = vst [vmem:[#allocation3] sm:$0xff] (!%p423_p8), %v216_v28 }
  0x4a   : > { %221 = vst [vmem:[#allocation3 + $0x8] sm:$0xff] %v217_v29  ;;  %222 = vst [vmem:[#allocation3 + $0x10] sm:$0xff] %v218_v30 }
  0x4b   : > { %207 = vst [vmem:[#allocation2 + $0x18] sm:$0xff] %v203_v32  ;;  %223 = vst [vmem:[#allocation3 + $0x18] sm:$0xff] %v219_v33 }
  0x4c PF: > { %p424_p11 = scmp.le.s32.totalorder %s688_s17, 256 }
  0x4d   : > { %v236_v34 = vlaneseq (!%p424_p11)  ;;  %v245_v35 = vstv (!%p424_p11), %s422_s25  ;;  %v228_v37 = vld [vmem:[%s678_s24] sm:$0xff] (!%p424_p11)  ;;  %v229_v48 = vld [vmem:[%s678_s24 + $0x8] sm:$0xff] (!%p424_p11)  ;;  %v230_v53 = vld [vmem:[%s678_s24 + $0x10] sm:$0xff] (!%p424_p11) }
  0x4e   : > { %227 = sbr.rel (%p424_p11) target bundleno = 98 (0x62), region = 40  ;;  %v232_v46 = vld [vmem:[%s678_s24 + $0x20] sm:$0xff] (!%p424_p11)  ;;  %v233_v49 = vld [vmem:[%s678_s24 + $0x28] sm:$0xff] (!%p424_p11)  ;;  %v234_v58 = vld [vmem:[%s678_s24 + $0x30] sm:$0xff] (!%p424_p11) }
  0x4f   : > { %v237_v36 = vshrl.u32 (!%p424_p11), %v236_v34, 7  ;;  %v231_v0 = vld [vmem:[%s678_s24 + $0x18] sm:$0xff] (!%p424_p11) }
  0x50   : > { %v235_v4 = vld [vmem:[%s678_s24 + $0x38] sm:$0xff] (!%p424_p11) }
  0x51   : > { %v241_v38 = vadd.s32 (!%p424_p11), 32, %v237_v36  ;;  %v246_v39 = vadd.s32 (!%p424_p11), %v245_v35, %v237_v36  ;;  %v238_v40 = vadd.s32 (!%p424_p11), 8, %v237_v36  ;;  %v242_v41 = vadd.s32 (!%p424_p11), 40, %v237_v36  ;;  %v278_v57 = vld [vmem:[#allocation2] sm:$0xff] (!%p424_p11)  ;;  %v279_v63 = vld [vmem:[#allocation2 + $0x8] sm:$0xff] (!%p424_p11) }
  0x52   : > { %v239_v42 = vadd.s32 (!%p424_p11), 16, %v237_v36  ;;  %v243_v43 = vadd.s32 (!%p424_p11), 48, %v237_v36  ;;  %v240_v44 = vadd.s32 (!%p424_p11), 24, %v237_v36  ;;  %v244_v45 = vadd.s32 (!%p424_p11), 56, %v237_v36  ;;  %v280_v6 = vld [vmem:[#allocation2 + $0x10] sm:$0xff] (!%p424_p11)  ;;  %v281_v12 = vld [vmem:[#allocation2 + $0x18] sm:$0xff] (!%p424_p11) }
  0x53   : > { %v250_v47 = vadd.s32 (!%p424_p11), %v245_v35, %v241_v38  ;;  %vm254_vm0 = vcmp.lt.s32.totalorder (!%p424_p11), %v246_v39, 256  ;;  %v247_v50 = vadd.s32 (!%p424_p11), %v245_v35, %v238_v40  ;;  %v251_v51 = vadd.s32 (!%p424_p11), %v245_v35, %v242_v41  ;;  %v294_v15 = vld [vmem:[#allocation3] sm:$0xff] (!%p424_p11)  ;;  %v295_v18 = vld [vmem:[#allocation3 + $0x8] sm:$0xff] (!%p424_p11)  ;;  %v296_v25 = vld [vmem:[#allocation3 + $0x10] sm:$0xff] (!%p424_p11) }
  0x54   : > { %v262_v52 = vsel (!%p424_p11), %vm254_vm0, %v228_v37, inf  ;;  %v248_v54 = vadd.s32 (!%p424_p11), %v245_v35, %v239_v42  ;;  %v252_v55 = vadd.s32 (!%p424_p11), %v245_v35, %v243_v43  ;;  %v249_v56 = vadd.s32 (!%p424_p11), %v245_v35, %v240_v44  ;;  %v297_v32 = vld [vmem:[#allocation3 + $0x18] sm:$0xff] (!%p424_p11) }
  0x55   : > { %vm258_vm1 = vcmp.lt.s32.totalorder %v250_v47, 256  ;;  %vm255_vm2 = vcmp.lt.s32.totalorder %v247_v50, 256  ;;  %vm259_vm3 = vcmp.lt.s32.totalorder %v251_v51, 256  ;;  %v253_v59 = vadd.s32 %v245_v35, %v244_v45 }
  0x56   : > { %v266_v60 = vsel %vm258_vm1, %v232_v46, inf  ;;  %v263_v61 = vsel %vm255_vm2, %v229_v48, inf  ;;  %v267_v62 = vsel %vm259_vm3, %v233_v49, inf  ;;  %vm256_vm4 = vcmp.lt.s32.totalorder %v248_v54, 256 }
  0x57   : > { %v282_v1 = vmin.f32 %v262_v52, %v266_v60  ;;  %v283_v2 = vmin.f32 %v263_v61, %v267_v62  ;;  %vm260_vm5 = vcmp.lt.s32.totalorder %v252_v55, 256  ;;  %v264_v3 = vsel %vm256_vm4, %v230_v53, inf }
  0x58   : > { %v268_v5 = vsel %vm260_vm5, %v234_v58, inf  ;;  %vm257_vm6 = vcmp.lt.s32.totalorder %v249_v56, 256  ;;  %vm261_vm7 = vcmp.lt.s32.totalorder %v253_v59, 256  ;;  %v270_v7 = vsel %vm254_vm0, %v228_v37, -inf }
  0x59   : > { %v286_v8 = vmin.f32 %v278_v57, %v282_v1  ;;  %v287_v9 = vmin.f32 %v279_v63, %v283_v2  ;;  %v284_v10 = vmin.f32 %v264_v3, %v268_v5  ;;  %v265_v11 = vsel %vm257_vm6, %v231_v0, inf }
  0x5a   : > { %v269_v13 = vsel %vm261_vm7, %v235_v4, inf  ;;  %v274_v14 = vsel %vm258_vm1, %v232_v46, -inf  ;;  %v271_v16 = vsel %vm255_vm2, %v229_v48, -inf  ;;  %v275_v17 = vsel %vm259_vm3, %v233_v49, -inf }
  0x5b   : > { %290 = vst [vmem:[#allocation2] sm:$0xff] %v286_v8  ;;  %291 = vst [vmem:[#allocation2 + $0x8] sm:$0xff] %v287_v9  ;;  %v288_v19 = vmin.f32 %v280_v6, %v284_v10  ;;  %v285_v20 = vmin.f32 %v265_v11, %v269_v13  ;;  %v298_v21 = vmax.f32 %v270_v7, %v274_v14  ;;  %v272_v23 = vsel %vm256_vm4, %v230_v53, -inf }
  0x5c   : > { %v299_v22 = vmax.f32 %v271_v16, %v275_v17  ;;  %v276_v24 = vsel %vm260_vm5, %v234_v58, -inf  ;;  %v273_v26 = vsel %vm257_vm6, %v231_v0, -inf  ;;  %v277_v27 = vsel %vm261_vm7, %v235_v4, -inf }
  0x5d   : > { %292 = vst [vmem:[#allocation2 + $0x10] sm:$0xff] %v288_v19  ;;  %v289_v28 = vmin.f32 %v281_v12, %v285_v20  ;;  %v302_v29 = vmax.f32 %v294_v15, %v298_v21  ;;  %v300_v31 = vmax.f32 %v272_v23, %v276_v24  ;;  %v301_v33 = vmax.f32 %v273_v26, %v277_v27 }
  0x5e   : > { %v303_v30 = vmax.f32 %v295_v18, %v299_v22 }
  0x5f   : > { %293 = vst [vmem:[#allocation2 + $0x18] sm:$0xff] %v289_v28  ;;  %306 = vst [vmem:[#allocation3] sm:$0xff] %v302_v29  ;;  %v304_v34 = vmax.f32 %v296_v25, %v300_v31  ;;  %v305_v35 = vmax.f32 %v297_v32, %v301_v33 }
  0x60   : > { %307 = vst [vmem:[#allocation3 + $0x8] sm:$0xff] %v303_v30 }
  0x61   : > { %308 = vst [vmem:[#allocation3 + $0x10] sm:$0xff] %v304_v34  ;;  %309 = vst [vmem:[#allocation3 + $0x18] sm:$0xff] %v305_v35 }
  0x62 PF: > { %p425_p7 = scmp.ne.s32.totalorder %s561_s9, 3 }
  0x63   : > { %v314_v36 = vld [vmem:[#allocation2] sm:$0xff] (!%p425_p7)  ;;  %v315_v37 = vld [vmem:[#allocation2 + $0x8] sm:$0xff] (!%p425_p7)  ;;  %vm340_vm8 = vcmask (!%p425_p7), 1040384  }
  0x64   : > { %313 = sbr.rel (%p425_p7) target bundleno = 123 (0x7b), region = 44  ;;  %v316_v38 = vld [vmem:[#allocation2 + $0x10] sm:$0xff] (!%p425_p7)  ;;  %v318_v40 = vmin.f32 (!%p425_p7), %v314_v36, %v315_v37 }
  0x66   : > { %v317_v39 = vld [vmem:[#allocation2 + $0x18] sm:$0xff] (!%p425_p7)  ;;  %v327_v41 = vld [vmem:[#allocation3] sm:$0xff] (!%p425_p7) }
  0x67   : > { %v328_v42 = vld [vmem:[#allocation3 + $0x8] sm:$0xff] (!%p425_p7)  ;;  %v319_v43 = vmin.f32 (!%p425_p7), %v316_v38, %v317_v39 }
  0x68   : > { %v329_v44 = vld [vmem:[#allocation3 + $0x10] sm:$0xff] (!%p425_p7)  ;;  %v330_v45 = vld [vmem:[#allocation3 + $0x18] sm:$0xff] (!%p425_p7)  ;;  %v331_v46 = vmax.f32 (!%p425_p7), %v327_v41, %v328_v42 }
  0x69   : > { %v332_v47 = vmax.f32 (!%p425_p7), %v329_v44, %v330_v45  ;;  %v320_v48 = vmin.f32 (!%p425_p7), %v318_v40, %v319_v43 }
  0x6b   : > { %v333_v49 = vmax.f32 %v331_v46, %v332_v47  ;;  %v321_v50 = vrot.slane %v320_v48, 4 }
  0x6d   : > { %v334_v51 = vrot.slane %v333_v49, 4  ;;  %v322_v52 = vmin.f32 %v320_v48, %v321_v50 }
  0x6f   : > { %v335_v53 = vmax.f32 %v333_v49, %v334_v51  ;;  %v323_v54 = vrot.slane %v322_v52, 2 }
  0x71   : > { %v336_v55 = vrot.slane %v335_v53, 2  ;;  %v324_v56 = vmin.f32 %v322_v52, %v323_v54 }
  0x73   : > { %v337_v57 = vmax.f32 %v335_v53, %v336_v55  ;;  %v325_v58 = vrot.slane %v324_v56, 1 }
  0x75   : > { %v338_v59 = vrot.slane %v337_v57, 1  ;;  %v326_v60 = vmin.f32 %v324_v56, %v325_v58 }
  0x77   : > { %v339_v61 = vmax.f32 %v337_v57, %v338_v59 }
  0x79   : > { %v341_v62 = vsel %vm340_vm8, %v326_v60, %v339_v61 }
  0x7a   : > { %342 = vst [vmem:[%s749_s1] sm:$0x3] %v341_v62 }
  0x7b PF: > { %s14_s11 = sadd.s32 1, %s569_s11   ;;  %s752_s6 = smov %s553_s7 }
  0x7c   : > { %p11_p9 = scmp.ge.s32.totalorder %s14_s11, 6   ;;  %s753_s7 = smov %s557_s8 }
  0x7d   : > { %s754_s8 = smov %s634_s21  ;;  %s755_s9 = smov %s565_s10 }
  0x7e   : > { %s756_s10 = smov %s758_s13  ;;  %13 = sbr.rel (!%p11_p9) target bundleno = 4 (0x4), region = 80 }
  0x85   :  { %362 = vsyncpa [#allocation5], 1 }
  0x86   :  { %364 = vsyncpa [#allocation5 + $0x1], 1 }

</bundles_post_ra>
